<compile_context>
chip_gen: v7x
topology: tpu7x:2x2x1
jax: 0.10.0
libtpu: 0.0.40
codegen_flags: <defaults>
</compile_context>

<pallas_src>
import jax
import jax.numpy as jnp
from jax import lax
from jax.experimental import pallas as pl
from jax.experimental.pallas import tpu as pltpu

# --- synthetic MODEL_CONFIG (small, consistent with the module) ---
HIDDEN = 32
HALF = HIDDEN // 2
NUM_CLS = 2
NUM_BIO = 7
NUM_REL = 2
VOCAB = 101
VOCAB_PAD = 128          # vocab rows padded to a full 128-lane/8-sublane tile
LN_EPS = 1e-5            # nn.LayerNorm default


def _round_up(x, m):
    return (x + m - 1) // m * m


# ---------------------------------------------------------------------------
# Kernel 1: fused embedding lookup + LayerNorm + bio_head MLP, tiled over the
# token axis.  Per grid step it sees a (TILE, 1) block of token ids and writes
# (TILE, H) normalized hidden states + (TILE, NUM_BIO) bio emissions.
# All weights / the padded embedding table are VMEM-resident across steps.
# ---------------------------------------------------------------------------
def _emb_ln_bio_kernel(ids_ref, emb_ref, g_ref, beta_ref,
                       w1_ref, b1_ref, w2_ref, b2_ref, w3_ref, b3_ref,
                       hid_ref, emis_ref):
    ids = ids_ref[...]                                               # (T, 1) int32
    T = ids.shape[0]
    # Embedding gather as a one-hot matmul (VOCAB_PAD = 128 keeps it MXU-tiled).
    onehot = (ids == lax.broadcasted_iota(jnp.int32, (T, VOCAB_PAD), 1)
              ).astype(jnp.float32)                                  # (T, 128)
    x = jnp.dot(onehot, emb_ref[...],
                preferred_element_type=jnp.float32)                  # (T, H)
    # LayerNorm(dropout(x)) with dropout = identity (eval mode).
    mean = jnp.mean(x, axis=-1, keepdims=True)
    var = jnp.mean((x - mean) ** 2, axis=-1, keepdims=True)
    hid = (x - mean) * lax.rsqrt(var + LN_EPS) * g_ref[...] + beta_ref[...]
    hid_ref[...] = hid
    # bio_head: Linear(H,H) -> ReLU -> Linear(H,H/2) -> ReLU -> Linear(H/2,NUM_BIO)
    z = jnp.maximum(
        jnp.dot(hid, w1_ref[...], preferred_element_type=jnp.float32) + b1_ref[...], 0.0)
    z = jnp.maximum(
        jnp.dot(z, w2_ref[...], preferred_element_type=jnp.float32) + b2_ref[...], 0.0)
    # NOTE: NUM_BIO=7-wide store is masked (vst.msk); kept narrow deliberately
    # to avoid 18x HBM writeback + a wrapper slice copy.
    emis_ref[...] = (
        jnp.dot(z, w3_ref[...], preferred_element_type=jnp.float32) + b3_ref[...])


# ---------------------------------------------------------------------------
# Kernel 2: relation branch.  Grid over pairs; scalar-prefetch (SMEM) carries
# pair_batch + span bounds; the index_map DMAs hidden[pair_batch[p]] directly
# (no HBM gather copy).  cat([c_vec, e_vec]) @ W1 is done as a split matmul.
# ---------------------------------------------------------------------------
def _rel_kernel(pb_ref, cs_ref, ce_ref, es_ref, ee_ref,          # SMEM prefetch
                h_ref, w1c_ref, w1e_ref, b1_ref, w2_ref, b2_ref, w3_ref, b3_ref,
                out_ref):
    p = pl.program_id(0)
    h = h_ref[0]                                                  # (S, H)
    S = h.shape[0]
    pos = lax.broadcasted_iota(jnp.int32, (S, 1), 0)              # (S, 1)
    c_mask = ((cs_ref[p] <= pos) & (pos <= ce_ref[p])).astype(jnp.float32)
    e_mask = ((es_ref[p] <= pos) & (pos <= ee_ref[p])).astype(jnp.float32)
    c_cnt = jnp.maximum(jnp.sum(c_mask, axis=0, keepdims=True), 1.0)   # clamp(min=1)
    e_cnt = jnp.maximum(jnp.sum(e_mask, axis=0, keepdims=True), 1.0)
    c_vec = jnp.sum(h * c_mask, axis=0, keepdims=True) / c_cnt         # (1, H)
    e_vec = jnp.sum(h * e_mask, axis=0, keepdims=True) / e_cnt
    z = (jnp.dot(c_vec, w1c_ref[...], preferred_element_type=jnp.float32)
         + jnp.dot(e_vec, w1e_ref[...], preferred_element_type=jnp.float32)
         + b1_ref[...])
    z = jnp.maximum(z, 0.0)
    z = jnp.maximum(
        jnp.dot(z, w2_ref[...], preferred_element_type=jnp.float32) + b2_ref[...], 0.0)
    out_ref[0] = (
        jnp.dot(z, w3_ref[...], preferred_element_type=jnp.float32) + b3_ref[...])


# ---------------------------------------------------------------------------
# Parameter init (deterministic; mirrors xavier_uniform_ / zeros_ of __init__)
# ---------------------------------------------------------------------------
def _xavier(key, fan_in, fan_out):
    bound = (6.0 / (fan_in + fan_out)) ** 0.5
    return jax.random.uniform(key, (fan_in, fan_out), jnp.float32, -bound, bound)


def init_params(key):
    ks = jax.random.split(key, 16)
    return {
        "emb": jax.random.normal(ks[0], (VOCAB, HIDDEN), jnp.float32) * 0.02,
        "ln_g": jnp.ones((1, HIDDEN), jnp.float32),
        "ln_b": jnp.zeros((1, HIDDEN), jnp.float32),
        # cls_head: Linear(H, H/2) -> ReLU -> Linear(H/2, NUM_CLS)
        "cls_w1": _xavier(ks[1], HIDDEN, HALF), "cls_b1": jnp.zeros((1, HALF), jnp.float32),
        "cls_w2": _xavier(ks[2], HALF, NUM_CLS), "cls_b2": jnp.zeros((1, NUM_CLS), jnp.float32),
        # bio_head
        "bio_w1": _xavier(ks[3], HIDDEN, HIDDEN), "bio_b1": jnp.zeros((1, HIDDEN), jnp.float32),
        "bio_w2": _xavier(ks[4], HIDDEN, HALF), "bio_b2": jnp.zeros((1, HALF), jnp.float32),
        "bio_w3": _xavier(ks[5], HALF, NUM_BIO), "bio_b3": jnp.zeros((1, NUM_BIO), jnp.float32),
        # rel_head: Linear(2H, H) -> ReLU -> Linear(H, H/2) -> ReLU -> Linear(H/2, NUM_REL)
        "rel_w1": _xavier(ks[6], 2 * HIDDEN, HIDDEN), "rel_b1": jnp.zeros((1, HIDDEN), jnp.float32),
        "rel_w2": _xavier(ks[7], HIDDEN, HALF), "rel_b2": jnp.zeros((1, HALF), jnp.float32),
        "rel_w3": _xavier(ks[8], HALF, NUM_REL), "rel_b3": jnp.zeros((1, NUM_REL), jnp.float32),
    }


# ---------------------------------------------------------------------------
# Forward pass (hot paths in Pallas, tiny glue in plain JAX)
# ---------------------------------------------------------------------------
def joint_causal_forward(params, input_ids, attention_mask,
                         bio_labels=None, pair_batch=None,
                         cause_starts=None, cause_ends=None,
                         effect_starts=None, effect_ends=None,
                         tile_tokens=1024):
    del attention_mask  # unused by the synthetic encoder (see TODO at top)
    B, S = input_ids.shape
    n_tok = B * S
    # Tile size: multiple of 8 sublanes, capped at 1024 rows (fits v7x's 64 MiB
    # VMEM with double-buffering; large enough to amortize per-step overhead).
    tile = tile_tokens if n_tok >= tile_tokens else _round_up(n_tok, 8)
    n_pad = _round_up(n_tok, tile)

    ids = input_ids.reshape(n_tok).astype(jnp.int32)
    if n_pad != n_tok:
        ids = jnp.pad(ids, (0, n_pad - n_tok))
    ids2d = ids.reshape(n_pad, 1)

    emb_pad = jnp.zeros((VOCAB_PAD, HIDDEN), jnp.float32).at[:VOCAB].set(params["emb"])

    row_spec = lambda shp: pl.BlockSpec(shp, lambda i: (i, 0))
    const_spec = lambda shp: pl.BlockSpec(shp, lambda i: (0, 0))

    mm_flops = 2 * (VOCAB_PAD * HIDDEN + HIDDEN * HIDDEN + HIDDEN * HALF + HALF * NUM_BIO)
    weight_bytes = 4 * (VOCAB_PAD * HIDDEN + HIDDEN * HIDDEN + HIDDEN * HALF
                        + HALF * NUM_BIO + 3 * HIDDEN + HALF + NUM_BIO)
    cost = pl.CostEstimate(
        flops=int(n_pad * (mm_flops + 10 * HIDDEN)),
        transcendentals=int(n_pad),
        bytes_accessed=int(n_pad * (4 + 4 * (HIDDEN + NUM_BIO)) + weight_bytes))

    hid_flat, emis_flat = pl.pallas_call(
        _emb_ln_bio_kernel,
        out_shape=(jax.ShapeDtypeStruct((n_pad, HIDDEN), jnp.float32),
                   jax.ShapeDtypeStruct((n_pad, NUM_BIO), jnp.float32)),
        grid=(n_pad // tile,),
        in_specs=[row_spec((tile, 1)),                 # token ids (tiled)
                  const_spec((VOCAB_PAD, HIDDEN)),     # embedding table (resident)
                  const_spec((1, HIDDEN)), const_spec((1, HIDDEN)),      # LN gamma/beta
                  const_spec((HIDDEN, HIDDEN)), const_spec((1, HIDDEN)),  # bio w1/b1
                  const_spec((HIDDEN, HALF)), const_spec((1, HALF)),      # bio w2/b2
                  const_spec((HALF, NUM_BIO)), const_spec((1, NUM_BIO))], # bio w3/b3
        out_specs=(row_spec((tile, HIDDEN)), row_spec((tile, NUM_BIO))),
        compiler_params=pltpu.CompilerParams(
            dimension_semantics=("parallel",),          # megacore shard on v7x
            vmem_limit_bytes=32 * 1024 * 1024),
        cost_estimate=cost,
    )(ids2d, emb_pad, params["ln_g"], params["ln_b"],
      params["bio_w1"], params["bio_b1"],
      params["bio_w2"], params["bio_b2"],
      params["bio_w3"], params["bio_b3"])

    if n_pad != n_tok:
        hid_flat = hid_flat[:n_tok]
        emis_flat = emis_flat[:n_tok]
    hidden = hid_flat.reshape(B, S, HIDDEN)
    emissions = emis_flat.reshape(B, S, NUM_BIO)

    # cls_head in plain JAX: (B,32)@(32,16)+(B,16)@(16,2) is a few kFLOPs, far
    # below a pallas_call's fixed launch/DMA overhead.
    z = jnp.maximum(hidden[:, 0] @ params["cls_w1"] + params["cls_b1"], 0.0)
    cls_logits = z @ params["cls_w2"] + params["cls_b2"]

    tag_loss = None
    if bio_labels is not None:
        tag_loss = jnp.float32(0.0)   # matches the torch.tensor(0.0) placeholder

    rel_logits = None
    if (pair_batch is not None and cause_starts is not None and cause_ends is not None
            and effect_starts is not None and effect_ends is not None):
        P = pair_batch.shape[0]
        i32 = lambda a: a.astype(jnp.int32)
        cspec = lambda shp: pl.BlockSpec(shp, lambda p, *_: (0, 0))
        rel_out = pl.pallas_call(
            _rel_kernel,
            out_shape=jax.ShapeDtypeStruct((P, 1, NUM_REL), jnp.float32),
            grid_spec=pltpu.PrefetchScalarGridSpec(
                num_scalar_prefetch=5,                   # pair_batch + 4 span arrays
                grid=(P,),
                in_specs=[
                    # hidden slab for this pair, DMA'd via data-dependent index_map
                    pl.BlockSpec((1, S, HIDDEN), lambda p, pb, *_: (pb[p], 0, 0)),
                    cspec((HIDDEN, HIDDEN)), cspec((HIDDEN, HIDDEN)), cspec((1, HIDDEN)),
                    cspec((HIDDEN, HALF)), cspec((1, HALF)),
                    cspec((HALF, NUM_REL)), cspec((1, NUM_REL))],
                out_specs=pl.BlockSpec((1, 1, NUM_REL), lambda p, *_: (p, 0, 0))),
            compiler_params=pltpu.CompilerParams(dimension_semantics=("parallel",)),
        )(i32(pair_batch), i32(cause_starts), i32(cause_ends),
          i32(effect_starts), i32(effect_ends),
          hidden,
          params["rel_w1"][:HIDDEN], params["rel_w1"][HIDDEN:], params["rel_b1"],
          params["rel_w2"], params["rel_b2"],
          params["rel_w3"], params["rel_b3"])
        rel_logits = rel_out.reshape(P, NUM_REL)

    return {"cls_logits": cls_logits, "bio_emissions": emissions,
            "tag_loss": tag_loss, "rel_logits": rel_logits, "hidden_states": hidden}


# ---------------------------------------------------------------------------
# Pure-JAX reference (same semantics) for a correctness check
# ---------------------------------------------------------------------------
def _reference(params, input_ids, pair_batch, cs, ce, es, ee):
    x = params["emb"][input_ids]
    mean = jnp.mean(x, axis=-1, keepdims=True)
    var = jnp.mean((x - mean) ** 2, axis=-1, keepdims=True)
    hid = (x - mean) / jnp.sqrt(var + LN_EPS) * params["ln_g"][0] + params["ln_b"][0]
    relu = lambda v: jnp.maximum(v, 0.0)
    cls = relu(hid[:, 0] @ params["cls_w1"] + params["cls_b1"]) @ params["cls_w2"] + params["cls_b2"]
    z = relu(hid @ params["bio_w1"] + params["bio_b1"])
    z = relu(z @ params["bio_w2"] + params["bio_b2"])
    emis = z @ params["bio_w3"] + params["bio_b3"]
    hs = hid[pair_batch]
    pos = jnp.arange(hs.shape[1])[None, :]
    cm = ((cs[:, None] <= pos) & (pos <= ce[:, None]))[:, :, None]
    em = ((es[:, None] <= pos) & (pos <= ee[:, None]))[:, :, None]
    cvec = (hs * cm).sum(1) / jnp.maximum(cm.sum(1), 1)
    evec = (hs * em).sum(1) / jnp.maximum(em.sum(1), 1)
    cat = jnp.concatenate([cvec, evec], axis=1)
    z = relu(cat @ params["rel_w1"] + params["rel_b1"])
    z = relu(z @ params["rel_w2"] + params["rel_b2"])
    rel = z @ params["rel_w3"] + params["rel_b3"]
    return hid, cls, emis, rel


if __name__ == "__main__":
    key = jax.random.PRNGKey(0)
    pkey, ikey = jax.random.split(key)
    params = init_params(pkey)

    B, S = 2, 8
    input_ids = jax.random.randint(ikey, (B, S), 0, VOCAB, dtype=jnp.int32)
    attention_mask = jnp.ones((B, S), jnp.int32)
    bio_labels = jnp.zeros((B, S), jnp.int32)
    pair_batch = jnp.array([0, 1, 0], jnp.int32)
    cause_starts = jnp.array([1, 2, 0], jnp.int32)
    cause_ends = jnp.array([2, 3, 1], jnp.int32)
    effect_starts = jnp.array([4, 5, 3], jnp.int32)
    effect_ends = jnp.array([6, 6, 5], jnp.int32)

    out = joint_causal_forward(params, input_ids, attention_mask,
                               bio_labels=bio_labels, pair_batch=pair_batch,
                               cause_starts=cause_starts, cause_ends=cause_ends,
                               effect_starts=effect_starts, effect_ends=effect_ends)
    jax.block_until_ready(out)

    hid_r, cls_r, emis_r, rel_r = _reference(params, input_ids, pair_batch,
                                             cause_starts, cause_ends,
                                             effect_starts, effect_ends)
    assert jnp.allclose(out["hidden_states"], hid_r, atol=1e-4)
    assert jnp.allclose(out["cls_logits"], cls_r, atol=1e-4)
    assert jnp.allclose(out["bio_emissions"], emis_r, atol=1e-4)
    assert jnp.allclose(out["rel_logits"], rel_r, atol=1e-4)
    assert float(out["tag_loss"]) == 0.0

    print("KERNEL_OK")
</pallas_src>

<mosaic_0001>
module attributes {stable_mosaic.version = 11 : i64} {
  func.func @_emb_ln_bio_kernel(%arg0: i32, %arg1: memref<16x1xi32, #tpu.memory_space<vmem>>, %arg2: memref<128x32xf32, #tpu.memory_space<vmem>>, %arg3: memref<1x32xf32, #tpu.memory_space<vmem>>, %arg4: memref<1x32xf32, #tpu.memory_space<vmem>>, %arg5: memref<32x32xf32, #tpu.memory_space<vmem>>, %arg6: memref<1x32xf32, #tpu.memory_space<vmem>>, %arg7: memref<32x16xf32, #tpu.memory_space<vmem>>, %arg8: memref<1x16xf32, #tpu.memory_space<vmem>>, %arg9: memref<16x7xf32, #tpu.memory_space<vmem>>, %arg10: memref<1x7xf32, #tpu.memory_space<vmem>>, %arg11: memref<16x32xf32, #tpu.memory_space<vmem>>, %arg12: memref<16x7xf32, #tpu.memory_space<vmem>>) attributes {dimension_semantics = [#tpu.dimension_semantics<parallel>], iteration_bounds = array<i64: 1>, scalar_prefetch = 0 : i64, scratch_operands = 0 : i64, tpu.core_type = #tpu.core_type<tc>, window_params = [{transform_indices = @transform_0, window_bounds = array<i64: 16, 1>}, {pipeline_mode = #tpu.pipeline_mode<synchronous>, transform_indices = @transform_1, window_bounds = array<i64: 128, 32>}, {pipeline_mode = #tpu.pipeline_mode<synchronous>, transform_indices = @transform_2, window_bounds = array<i64: 1, 32>}, {pipeline_mode = #tpu.pipeline_mode<synchronous>, transform_indices = @transform_3, window_bounds = array<i64: 1, 32>}, {pipeline_mode = #tpu.pipeline_mode<synchronous>, transform_indices = @transform_4, window_bounds = array<i64: 32, 32>}, {pipeline_mode = #tpu.pipeline_mode<synchronous>, transform_indices = @transform_5, window_bounds = array<i64: 1, 32>}, {pipeline_mode = #tpu.pipeline_mode<synchronous>, transform_indices = @transform_6, window_bounds = array<i64: 32, 16>}, {pipeline_mode = #tpu.pipeline_mode<synchronous>, transform_indices = @transform_7, window_bounds = array<i64: 1, 16>}, {pipeline_mode = #tpu.pipeline_mode<synchronous>, transform_indices = @transform_8, window_bounds = array<i64: 16, 7>}, {pipeline_mode = #tpu.pipeline_mode<synchronous>, transform_indices = @transform_9, window_bounds = array<i64: 1, 7>}, {transform_indices = @transform_10, window_bounds = array<i64: 16, 32>}, {transform_indices = @transform_11, window_bounds = array<i64: 16, 7>}]} {
    %c0 = arith.constant 0 : index
    %c0_0 = arith.constant 0 : index
    %0 = vector.load %arg1[%c0, %c0_0] : memref<16x1xi32, #tpu.memory_space<vmem>>, vector<16x1xi32>
    %1 = tpu.iota {dimensions = array<i32: 1>} : vector<16x128xi32>
    %2 = vector.broadcast %0 : vector<16x1xi32> to vector<16x128xi32>
    %3 = arith.cmpi eq, %2, %1 : vector<16x128xi32>
    %4 = arith.extui %3 : vector<16x128xi1> to vector<16x128xi32>
    %5 = arith.sitofp %4 : vector<16x128xi32> to vector<16x128xf32>
    %c0_1 = arith.constant 0 : index
    %c0_2 = arith.constant 0 : index
    %6 = vector.load %arg2[%c0_1, %c0_2] : memref<128x32xf32, #tpu.memory_space<vmem>>, vector<128x32xf32>
    %cst = arith.constant dense<0.000000e+00> : vector<16x32xf32>
    %7 = tpu.matmul %5, %6, %cst {dimension_numbers = #tpu.dot_dimension_numbers<[1], [0], [0], [1], [0, 0, 1, 1], [], []>} : vector<16x128xf32>, vector<128x32xf32>, vector<16x32xf32> -> vector<16x32xf32>
    %cst_3 = arith.constant dense<0.000000e+00> : vector<16xf32>
    %8 = vector.multi_reduction <add>, %7, %cst_3 [1] : vector<16x32xf32> to vector<16xf32>
    %9 = vector.shape_cast %8 : vector<16xf32> to vector<16x1xf32>
    %cst_4 = arith.constant 3.200000e+01 : f32
    %10 = vector.broadcast %cst_4 : f32 to vector<16x1xf32>
    %11 = arith.divf %9, %10 : vector<16x1xf32>
    %12 = vector.broadcast %11 : vector<16x1xf32> to vector<16x32xf32>
    %13 = arith.subf %7, %12 : vector<16x32xf32>
    %14 = arith.mulf %13, %13 : vector<16x32xf32>
    %cst_5 = arith.constant dense<0.000000e+00> : vector<16xf32>
    %15 = vector.multi_reduction <add>, %14, %cst_5 [1] : vector<16x32xf32> to vector<16xf32>
    %16 = vector.shape_cast %15 : vector<16xf32> to vector<16x1xf32>
    %cst_6 = arith.constant 3.200000e+01 : f32
    %17 = vector.broadcast %cst_6 : f32 to vector<16x1xf32>
    %18 = arith.divf %16, %17 : vector<16x1xf32>
    %19 = vector.broadcast %11 : vector<16x1xf32> to vector<16x32xf32>
    %20 = arith.subf %7, %19 : vector<16x32xf32>
    %cst_7 = arith.constant 9.99999974E-6 : f32
    %21 = vector.broadcast %cst_7 : f32 to vector<16x1xf32>
    %22 = arith.addf %18, %21 : vector<16x1xf32>
    %23 = math.rsqrt %22 : vector<16x1xf32>
    %24 = vector.broadcast %23 : vector<16x1xf32> to vector<16x32xf32>
    %25 = arith.mulf %20, %24 : vector<16x32xf32>
    %c0_8 = arith.constant 0 : index
    %c0_9 = arith.constant 0 : index
    %26 = vector.load %arg3[%c0_8, %c0_9] : memref<1x32xf32, #tpu.memory_space<vmem>>, vector<1x32xf32>
    %27 = vector.broadcast %26 : vector<1x32xf32> to vector<16x32xf32>
    %28 = arith.mulf %25, %27 : vector<16x32xf32>
    %c0_10 = arith.constant 0 : index
    %c0_11 = arith.constant 0 : index
    %29 = vector.load %arg4[%c0_10, %c0_11] : memref<1x32xf32, #tpu.memory_space<vmem>>, vector<1x32xf32>
    %30 = vector.broadcast %29 : vector<1x32xf32> to vector<16x32xf32>
    %31 = arith.addf %28, %30 : vector<16x32xf32>
    %c0_12 = arith.constant 0 : index
    %c0_13 = arith.constant 0 : index
    %32 = vector.load %arg11[%c0_12, %c0_13] : memref<16x32xf32, #tpu.memory_space<vmem>>, vector<16x32xf32>
    tpu.vector_store %arg11[%c0_12, %c0_13], %31 {strides = array<i32>} : memref<16x32xf32, #tpu.memory_space<vmem>>, vector<16x32xf32>,
    %c0_14 = arith.constant 0 : index
    %c0_15 = arith.constant 0 : index
    %33 = vector.load %arg5[%c0_14, %c0_15] : memref<32x32xf32, #tpu.memory_space<vmem>>, vector<32x32xf32>
    %cst_16 = arith.constant dense<0.000000e+00> : vector<16x32xf32>
    %34 = tpu.matmul %31, %33, %cst_16 {dimension_numbers = #tpu.dot_dimension_numbers<[1], [0], [0], [1], [0, 0, 1, 1], [], []>} : vector<16x32xf32>, vector<32x32xf32>, vector<16x32xf32> -> vector<16x32xf32>
    %c0_17 = arith.constant 0 : index
    %c0_18 = arith.constant 0 : index
    %35 = vector.load %arg6[%c0_17, %c0_18] : memref<1x32xf32, #tpu.memory_space<vmem>>, vector<1x32xf32>
    %36 = vector.broadcast %35 : vector<1x32xf32> to vector<16x32xf32>
    %37 = arith.addf %34, %36 : vector<16x32xf32>
    %cst_19 = arith.constant 0.000000e+00 : f32
    %38 = vector.broadcast %cst_19 : f32 to vector<16x32xf32>
    %39 = arith.maximumf %37, %38 : vector<16x32xf32>
    %c0_20 = arith.constant 0 : index
    %c0_21 = arith.constant 0 : index
    %40 = vector.load %arg7[%c0_20, %c0_21] : memref<32x16xf32, #tpu.memory_space<vmem>>, vector<32x16xf32>
    %cst_22 = arith.constant dense<0.000000e+00> : vector<16x16xf32>
    %41 = tpu.matmul %39, %40, %cst_22 {dimension_numbers = #tpu.dot_dimension_numbers<[1], [0], [0], [1], [0, 0, 1, 1], [], []>} : vector<16x32xf32>, vector<32x16xf32>, vector<16x16xf32> -> vector<16x16xf32>
    %c0_23 = arith.constant 0 : index
    %c0_24 = arith.constant 0 : index
    %42 = vector.load %arg8[%c0_23, %c0_24] : memref<1x16xf32, #tpu.memory_space<vmem>>, vector<1x16xf32>
    %43 = vector.broadcast %42 : vector<1x16xf32> to vector<16x16xf32>
    %44 = arith.addf %41, %43 : vector<16x16xf32>
    %cst_25 = arith.constant 0.000000e+00 : f32
    %45 = vector.broadcast %cst_25 : f32 to vector<16x16xf32>
    %46 = arith.maximumf %44, %45 : vector<16x16xf32>
    %c0_26 = arith.constant 0 : index
    %c0_27 = arith.constant 0 : index
    %47 = vector.load %arg9[%c0_26, %c0_27] : memref<16x7xf32, #tpu.memory_space<vmem>>, vector<16x7xf32>
    %cst_28 = arith.constant dense<0.000000e+00> : vector<16x7xf32>
    %48 = tpu.matmul %46, %47, %cst_28 {dimension_numbers = #tpu.dot_dimension_numbers<[1], [0], [0], [1], [0, 0, 1, 1], [], []>} : vector<16x16xf32>, vector<16x7xf32>, vector<16x7xf32> -> vector<16x7xf32>
    %c0_29 = arith.constant 0 : index
    %c0_30 = arith.constant 0 : index
    %49 = vector.load %arg10[%c0_29, %c0_30] : memref<1x7xf32, #tpu.memory_space<vmem>>, vector<1x7xf32>
    %50 = vector.broadcast %49 : vector<1x7xf32> to vector<16x7xf32>
    %51 = arith.addf %48, %50 : vector<16x7xf32>
    %c0_31 = arith.constant 0 : index
    %c0_32 = arith.constant 0 : index
    %52 = vector.load %arg12[%c0_31, %c0_32] : memref<16x7xf32, #tpu.memory_space<vmem>>, vector<16x7xf32>
    tpu.vector_store %arg12[%c0_31, %c0_32], %51 {strides = array<i32>} : memref<16x7xf32, #tpu.memory_space<vmem>>, vector<16x7xf32>,
    return
  }
  func.func @transform_0(%arg0: i32) -> (i32, i32) {
    %c0_i32 = arith.constant 0 : i32
    %c0_i32_0 = arith.constant 0 : i32
    return %arg0, %c0_i32 : i32, i32
  }
  func.func @transform_1(%arg0: i32) -> (i32, i32) {
    %c0_i32 = arith.constant 0 : i32
    %c0_i32_0 = arith.constant 0 : i32
    %c0_i32_1 = arith.constant 0 : i32
    return %c0_i32, %c0_i32_0 : i32, i32
  }
  func.func @transform_2(%arg0: i32) -> (i32, i32) {
    %c0_i32 = arith.constant 0 : i32
    %c0_i32_0 = arith.constant 0 : i32
    %c0_i32_1 = arith.constant 0 : i32
    return %c0_i32, %c0_i32_0 : i32, i32
  }
  func.func @transform_3(%arg0: i32) -> (i32, i32) {
    %c0_i32 = arith.constant 0 : i32
    %c0_i32_0 = arith.constant 0 : i32
    %c0_i32_1 = arith.constant 0 : i32
    return %c0_i32, %c0_i32_0 : i32, i32
  }
  func.func @transform_4(%arg0: i32) -> (i32, i32) {
    %c0_i32 = arith.constant 0 : i32
    %c0_i32_0 = arith.constant 0 : i32
    %c0_i32_1 = arith.constant 0 : i32
    return %c0_i32, %c0_i32_0 : i32, i32
  }
  func.func @transform_5(%arg0: i32) -> (i32, i32) {
    %c0_i32 = arith.constant 0 : i32
    %c0_i32_0 = arith.constant 0 : i32
    %c0_i32_1 = arith.constant 0 : i32
    return %c0_i32, %c0_i32_0 : i32, i32
  }
  func.func @transform_6(%arg0: i32) -> (i32, i32) {
    %c0_i32 = arith.constant 0 : i32
    %c0_i32_0 = arith.constant 0 : i32
    %c0_i32_1 = arith.constant 0 : i32
    return %c0_i32, %c0_i32_0 : i32, i32
  }
  func.func @transform_7(%arg0: i32) -> (i32, i32) {
    %c0_i32 = arith.constant 0 : i32
    %c0_i32_0 = arith.constant 0 : i32
    %c0_i32_1 = arith.constant 0 : i32
    return %c0_i32, %c0_i32_0 : i32, i32
  }
  func.func @transform_8(%arg0: i32) -> (i32, i32) {
    %c0_i32 = arith.constant 0 : i32
    %c0_i32_0 = arith.constant 0 : i32
    %c0_i32_1 = arith.constant 0 : i32
    return %c0_i32, %c0_i32_0 : i32, i32
  }
  func.func @transform_9(%arg0: i32) -> (i32, i32) {
    %c0_i32 = arith.constant 0 : i32
    %c0_i32_0 = arith.constant 0 : i32
    %c0_i32_1 = arith.constant 0 : i32
    return %c0_i32, %c0_i32_0 : i32, i32
  }
  func.func @transform_10(%arg0: i32) -> (i32, i32) {
    %c0_i32 = arith.constant 0 : i32
    %c0_i32_0 = arith.constant 0 : i32
    return %arg0, %c0_i32 : i32, i32
  }
  func.func @transform_11(%arg0: i32) -> (i32, i32) {
    %c0_i32 = arith.constant 0 : i32
    %c0_i32_0 = arith.constant 0 : i32
    return %arg0, %c0_i32 : i32, i32
  }
}

</mosaic_0001>

<bundles_post_ra>
// kernel: tpu_custom_call.1
= control target key start
LH: loop header
LB: loop body
LE: loop exit
PB: predicated region body
PF: predicated region fallthrough
CT: control target
= control target key end

     0   :  { %v694_v2 = vmov 0   ;;  %s886_s0 = inlined_call_operand.vmem [shape: s32[16,1], index: 0, kind: input, shape index: {}]   ;;  %s887_s1 = inlined_call_operand.vmem [shape: f32[128,32], index: 1, kind: input, shape index: {}]   ;;  %s888_s2 = inlined_call_operand.vmem [shape: f32[1,32], index: 2, kind: input, shape index: {}]   ;;  %s889_s3 = inlined_call_operand.vmem [shape: f32[1,32], index: 3, kind: input, shape index: {}]   ;;  %s890_s4 = inlined_call_operand.vmem [shape: f32[32,32], index: 4, kind: input, shape index: {}]   ;;  %s891_s5 = inlined_call_operand.vmem [shape: f32[1,32], index: 5, kind: input, shape index: {}]   ;;  %s892_s6 = inlined_call_operand.vmem [shape: f32[32,16], index: 6, kind: input, shape index: {}]   ;;  %s893_s7 = inlined_call_operand.vmem [shape: f32[1,16], index: 7, kind: input, shape index: {}]   ;;  %s894_s8 = inlined_call_operand.vmem [shape: f32[16,7], index: 8, kind: input, shape index: {}]   ;;  %s895_s9 = inlined_call_operand.vmem [shape: f32[1,7], index: 9, kind: input, shape index: {}]   ;;  %s896_s10 = inlined_call_operand.hbm [shape: f32[16,32], index: 10, kind: output, shape index: {0}]   ;;  %s897_s11 = inlined_call_operand.vmem [shape: f32[16,7], index: 11, kind: output, shape index: {1}]  }
   0x1   :  { %v38_v0 = vld [vmem:[%s886_s0] sm:$0xff]  ;;  %665 = vset.pattern.permute.xlu0 %v694_v2  ;;  %v55_v3 = vld [vmem:[%s887_s1 + $0x8] sm:$0xff]  ;;  %v56_v4 = vld [vmem:[%s887_s1 + $0x10] sm:$0xff] }
   0x2   :  { %v54_v1 = vld [vmem:[%s887_s1] sm:$0xff]  ;;  %v57_v5 = vld [vmem:[%s887_s1 + $0x18] sm:$0xff]  ;;  %43 = vperm.xlu0 %665, %v38_v0   ;;  %v39_v8 = vld [vmem:[%s886_s0 + $0x8] sm:$0xff] }
   0x3   :  { %v608_v6 = vpack.c.bf16 %v55_v3, %v54_v1  ;;  %v612_v7 = vpack.c.bf16 %v57_v5, %v56_v4  ;;  %v58_v9 = vld [vmem:[%s887_s1 + $0x20] sm:$0xff]  ;;  %v59_v10 = vld [vmem:[%s887_s1 + $0x28] sm:$0xff] }
   0x4   :  { %v616_v11 = vpack.c.bf16 %v59_v10, %v58_v9 }
   0x5   :  { %609 = vmatprep.subr.bf16.mxu0 %v608_v6 }
   0x6   :  { %611 = vmatpush3.bf16.msra.mxu0 %v608_v6  ;;  %46 = vperm.xlu0 %665, %v39_v8  }
   0x7   :  { %613 = vmatprep.subr.bf16.mxu0 %v612_v7 }
   0x8   :  { %17 = vsyncpa [#allocation3], 0  ;;  %v60_v12 = vld [vmem:[%s887_s1 + $0x30] sm:$0xff]  ;;  %v61_v13 = vld [vmem:[%s887_s1 + $0x38] sm:$0xff]  ;;  %v40_v27 = vlaneseq  ;;  %v695_v30 = vmov 1.0   ;;  %vm145_vm2 = vcmask 261120  }
   0x9   :  { %v620_v14 = vpack.c.bf16 %v61_v13, %v60_v12  ;;  %v62_v15 = vld [vmem:[%s887_s1 + $0x40] sm:$0xff]  ;;  %v63_v16 = vld [vmem:[%s887_s1 + $0x48] sm:$0xff]  ;;  %v64_v18 = vld [vmem:[%s887_s1 + $0x50] sm:$0xff]  ;;  %vm390_vm3 = vcmask 130048   ;;  %s696_s15 = smov [#allocation2]  }
   0xa   :  { %615 = vmatpush3.bf16.msra.mxu0 %v612_v7  ;;  %v624_v17 = vpack.c.bf16 %v63_v16, %v62_v15  ;;  %v65_v19 = vld [vmem:[%s887_s1 + $0x58] sm:$0xff]  ;;  %v66_v21 = vld [vmem:[%s887_s1 + $0x60] sm:$0xff]  ;;  %v67_v22 = vld [vmem:[%s887_s1 + $0x68] sm:$0xff]  ;;  %v41_v28 = vand.u32 127, %v40_v27  ;;  %s480_s16 = sshll.u32 %s696_s15, 4  ;;  %s481_s16 = int_to_ptr.vmem [resolvable:$true] %s480_s16 }
   0xb   :  { %617 = vmatprep.subr.bf16.mxu0 %v616_v11  ;;  %v628_v20 = vpack.c.bf16 %v65_v19, %v64_v18  ;;  %v632_v23 = vpack.c.bf16 %v67_v22, %v66_v21  ;;  %v68_v24 = vld [vmem:[%s887_s1 + $0x70] sm:$0xff]  ;;  %v69_v25 = vld [vmem:[%s887_s1 + $0x78] sm:$0xff]  ;;  %v193_v46 = vld [vmem:[%s890_s4] sm:$0xff]  ;;  %p675_p1 = scmp.lt.s32.totalorder %s481_s16, %s481_s16 }
   0xc   :  { %v636_v26 = vpack.c.bf16 %v69_v25, %v68_v24  ;;  %v194_v47 = vld [vmem:[%s890_s4 + $0x8] sm:$0xff]  ;;  %v195_v48 = vld [vmem:[%s890_s4 + $0x10] sm:$0xff]  ;;  %v196_v50 = vld [vmem:[%s890_s4 + $0x18] sm:$0xff] }
   0xd   :  { %v640_v49 = vpack.c.bf16 %v194_v47, %v193_v46  ;;  %v644_v51 = vpack.c.bf16 %v196_v50, %v195_v48  ;;  %v287_v52 = vld [vmem:[%s892_s6] sm:$0xff]  ;;  %v288_v53 = vld [vmem:[%s892_s6 + $0x8] sm:$0xff]  ;;  %v289_v7 = vld [vmem:[%s892_s6 + $0x10] sm:$0xff] }
   0xe   :  { %619 = vmatpush3.bf16.msra.mxu0 %v616_v11  ;;  %v648_v54 = vpack.c.bf16 %v288_v53, %v287_v52  ;;  %v499_v62 = vld [vmem:[%s888_s2] ss:$0 sm:$0xff]  ;;  %v290_v8 = vld [vmem:[%s892_s6 + $0x18] sm:$0xff]  ;;  %v382_v18 = vld [vmem:[%s894_s8 + $0x8] sm:$0xff] }
   0xf   :  { %621 = vmatprep.subr.bf16.mxu0 %v620_v14  ;;  %641 = vmatprep.subr.bf16.mxu1 %v640_v49  ;;  %v500_v0 = vld [vmem:[%s889_s3] ss:$0 sm:$0xff]  ;;  %v652_v9 = vpack.c.bf16 %v290_v8, %v289_v7 }
  0x10   :  { %643 = vmatpush3.bf16.msra.mxu1 %v640_v49  ;;  %v501_v10 = vld [vmem:[%s891_s5] ss:$0 sm:$0xff] }
  0x11   :  { %645 = vmatprep.subr.bf16.mxu1 %v644_v51 }
  0x12   :  { %623 = vmatpush3.bf16.msra.mxu0 %v620_v14 }
  0x13   :  { %625 = vmatprep.subr.bf16.mxu0 %v624_v17 }
  0x14   :  { %647 = vmatpush3.bf16.msra.mxu1 %v644_v51 }
  0x15   :  { %649 = vmatprep.subr.bf16.mxu1 %v648_v54 }
  0x16   :  { %627 = vmatpush3.bf16.msra.mxu0 %v624_v17  ;;  %v381_v17 = vld [vmem:[%s894_s8] sm:$0xff]  ;;  %s670_s8 = scalar_lea.vmem %s481_s16, 256 }
  0x17   :  { %629 = vmatprep.subr.bf16.mxu0 %v628_v20  ;;  %v656_v19 = vpack.c.bf16 %v382_v18, %v381_v17  ;;  %p671_p0 = scmp.ne.s32.totalorder %s481_s16, %s670_s8  ;;  %p676_p2 = scmp.lt.s32.totalorder %s670_s8, %s670_s8 }
  0x19   :  { %p677_p3 = por %p676_p2, %p675_p1 }
  0x1a   :  { %631 = vmatpush3.bf16.msra.mxu0 %v628_v20  ;;  %v504_v20 = vld [vmem:[%s893_s7] ss:$0 sm:$0xff] }
  0x1b   :  { %633 = vmatprep.subr.bf16.mxu0 %v632_v23  ;;  %p678_p4 = pnand %p677_p3, %p671_p0 }
  0x1e   :  { %635 = vmatpush3.bf16.msra.mxu0 %v632_v23 }
  0x1f   :  { %637 = vmatprep.subr.bf16.mxu0 %v636_v26 }
  0x22   :  { %639 = vmatpush3.bf16.msra.mxu0 %v636_v26 }
  0x81   :  { %v44_v29 = vpop.permute.xlu0 %43 }
  0x82   :  { %vm48_vm0 = vcmp.eq.s32.totalorder %v44_v29, %v41_v28 }
  0x83   :  { %576 = vmatprep.mubr.msk.f32.mxu0 %vm48_vm0, %v695_v30 }
  0x85   :  { %v47_v31 = vpop.permute.xlu0 %46 }
  0x86   :  { %vm49_vm1 = vcmp.eq.s32.totalorder %v47_v31, %v41_v28 }
  0x87   :  { %577 = vmatmul.mubr.msk.f32.vlgmr.msra.gmra.mrb[0].mxu0 %vm49_vm1, %v695_v30 }
 0x15a   :  { %v578_v32 = vpop.f32.mrb[0].mxu0 }
 0x15b   :  { %v136_v33 = vpop.f32.mrb[1].mxu0  ;;  %v149_v35 = vsel %vm145_vm2, %v578_v32, 0.0 }
 0x15c   :  { %v146_v34 = vsel %vm145_vm2, %v136_v33, 0.0 }
 0x15d   :  { %147 = vadd.xlane.f32.xlu1 %v146_v34 }
 0x161   :  { %150 = vadd.xlane.f32.xlu1 %v149_v35 }
 0x1ea   :  { %v148_v36 = vpop.xlane.xlu1 %147 }
 0x1eb   :  { %v153_v37 = vmul.f32 0.03125, %v148_v36 }
 0x1ed   :  { %v155_v38 = vsub.f32 %v136_v33, %v153_v37 }
 0x1ee   :  { %v151_v39 = vpop.xlane.xlu1 %150 }
 0x1ef   :  { %v154_v40 = vmul.f32 0.03125, %v151_v39  ;;  %v157_v41 = vmul.f32 %v155_v38, %v155_v38 }
 0x1f1   :  { %v156_v42 = vsub.f32 %v578_v32, %v154_v40  ;;  %v159_v43 = vsel %vm145_vm2, %v157_v41, 0.0 }
 0x1f2   :  { %160 = vadd.xlane.f32.xlu0 %v159_v43 }
 0x1f3   :  { %v158_v44 = vmul.f32 %v156_v42, %v156_v42 }
 0x1f5   :  { %v162_v45 = vsel %vm145_vm2, %v158_v44, 0.0 }
 0x1f6   :  { %163 = vadd.xlane.f32.xlu1 %v162_v45 }
 0x27f   :  { %v161_v55 = vpop.xlane.xlu0 %160 }
 0x280   :  { %v165_v56 = vmul.f32 0.03125, %v161_v55 }
 0x282   :  { %v167_v57 = vadd.f32 1e-05, %v165_v56 }
 0x283   :  { %v164_v58 = vpop.xlane.xlu1 %163 }
 0x284   :  { %666 = vrsqrt.f32 %v167_v57  ;;  %v166_v59 = vmul.f32 0.03125, %v164_v58 }
 0x286   :  { %v168_v60 = vadd.f32 1e-05, %v166_v59 }
 0x288   :  { %668 = vrsqrt.f32 %v168_v60 }
 0x28e   :  { %v667_v61 = vpop.eup %666 }
 0x28f   :  { %v171_v63 = vmul.f32 %v667_v61, %v155_v38 }
 0x291   :  { %v180_v1 = vmul.f32 %v499_v62, %v171_v63 }
 0x292   :  { %v669_v2 = vpop.eup %668 }
 0x293   :  { %v172_v3 = vmul.f32 %v669_v2, %v156_v42  ;;  %v189_v4 = vadd.f32 %v500_v0, %v180_v1 }
 0x295   :  { %v181_v5 = vmul.f32 %v499_v62, %v172_v3  ;;  %191 = vst.msk [vmem:[#allocation2] sm:$0xff] %vm145_vm2, %v189_v4  ;;  %587 = vmatprep.mubr.msk.f32.mxu1 %vm145_vm2, %v189_v4 }
 0x297   :  { %v190_v6 = vadd.f32 %v500_v0, %v181_v5 }
 0x299   :  { %192 = vst.msk [vmem:[#allocation2 + $0x8] sm:$0xff] %vm145_vm2, %v190_v6  ;;  %588 = vmatmul.mubr.msk.f32.vlgmr.msra.gmra.mrb[0].mxu1 %vm145_vm2, %v190_v6 }
 0x29a   :  { %651 = vmatpush3.bf16.msra.mxu1 %v648_v54 }
 0x29b   :  { %653 = vmatprep.subr.bf16.mxu1 %v652_v9 }
 0x29e   :  { %655 = vmatpush3.bf16.msra.mxu1 %v652_v9 }
 0x29f   :  { %657 = vmatprep.subr.bf16.mxu1 %v656_v19 }
 0x36c   :  { %v589_v11 = vpop.f32.mrb[0].mxu1 }
 0x36d   :  { %v282_v12 = vadd.f32 %v589_v11, %v501_v10  ;;  %v276_v13 = vpop.f32.mrb[1].mxu1 }
 0x36e   :  { %v277_v14 = vadd.f32 %v501_v10, %v276_v13 }
 0x36f   :  { %v286_v16 = vmax.f32 %v282_v12, 0.0 }
 0x370   :  { %v285_v15 = vmax.f32 %v277_v14, 0.0 }
 0x372   :  { %598 = vmatprep.mubr.msk.f32.mxu1 %vm145_vm2, %v285_v15 }
 0x373   :  { %599 = vmatmul.mubr.msk.f32.vlgmr.msra.gmra.mrb[2].mxu1 %vm145_vm2, %v286_v16 }
 0x374   :  { %659 = vmatpush3.bf16.msra.mxu1 %v656_v19 }
 0x446   :  { %v600_v21 = vpop.f32.mrb[2].mxu1 }
 0x447   :  { %v376_v22 = vadd.f32 %v600_v21, %v504_v20  ;;  %v370_v23 = vpop.f32.mrb[3].mxu1 }
 0x448   :  { %v371_v24 = vadd.f32 %v504_v20, %v370_v23 }
 0x449   :  { %v380_v26 = vmax.f32 %v376_v22, 0.0 }
 0x44a   :  { %v379_v25 = vmax.f32 %v371_v24, 0.0 }
 0x44c   :  { %605 = vmatprep.mubr.msk.f32.mxu1 %vm390_vm3, %v379_v25 }
 0x44d   :  { %606 = vmatmul.mubr.msk.f32.vlgmr.msra.gmra.mrb[4].mxu1 %vm390_vm3, %v380_v26 }
 0x44e   :  { %681 = shalt.err (!%p678_p4)
}
 0x44f   :  { %s682_s17 = scalar_lea.hbm %s896_s10, 256 }
 0x450   :  { %p683_p5 = scmp.ne.s32.totalorder %s896_s10, %s682_s17  ;;  %p686_p6 = scmp.lt.u32.totalorder %s682_s17, %s896_s10 }
 0x452   :  { %p688_p7 = pnand %p686_p6, %p683_p5 }
 0x454   :  { %691 = shalt.err (!%p688_p7)
}
 0x455   :  { %s697_s22 = smov 128   ;;  %s698_s23 = smov 8   ;;  %v507_v27 = vld [vmem:[%s895_s9] ss:$0 sm:$0xff]  ;;  %vm472_vm4 = vcmask 56320  }
 0x456   :  { %486 = dma.vmem_to_hbm [thread:$0]  %s481_s16, 256, %s896_s10, [#allocation3], %s697_s22, %s697_s22, %s698_s23  }
 0x520   :  { %v607_v28 = vpop.f32.mrb[4].mxu1 }
 0x521   :  { %v469_v29 = vadd.f32 %v607_v28, %v507_v27  ;;  %v463_v30 = vpop.f32.mrb[5].mxu1 }
 0x522   :  { %v464_v31 = vadd.f32 %v507_v27, %v463_v30 }
 0x523   :  { %474 = vst.msk [vmem:[%s897_s11 + $0x8] sm:$0xff] %vm472_vm4, %v469_v29 }
 0x524   :  { %473 = vst.msk [vmem:[%s897_s11] sm:$0xff] %vm472_vm4, %v464_v31 }
 0x525   :  { %692 = dma.done.wait [#allocation3], 256  }
 0x526   :  { %693 = vsyncadd [#allocation3], 4294967040 }
 0x527   :  { %494 = vsyncpa [#allocation3], 1 }

</bundles_post_ra>
